<compile_context>
chip_gen: v5e
topology: v5e:2x2
jax: 0.10.0
libtpu: 0.0.40
codegen_flags: <defaults>
</compile_context>

<pallas_src>
import jax
import jax.numpy as jnp
from jax.experimental import pallas as pl
from jax.experimental.pallas import tpu as pltpu


# -----------------------------------------------------------------------------
# helpers
# -----------------------------------------------------------------------------
def _vmem_budget_bytes(frac=0.6, fallback=64 * 1024 * 1024):
    """Per-kernel VMEM budget: a fraction of physical VMEM (128 MiB on v5e/v6e,
    64 MiB per TensorCore on v7x); conservative fallback if the query fails."""
    try:
        cap = pltpu.get_tpu_info().vmem_capacity_bytes
    except Exception:   # older jax / query unavailable -> safe on every chip
        cap = fallback
    return int(cap * frac)


def _pick_tile(dim, preferred, aligns):
    """Largest divisor of `dim` that is <= preferred and a multiple of the largest
    feasible alignment in `aligns`; falls back to the full dim (full-extent blocks
    bypass the (8,128) rule)."""
    preferred = min(preferred, dim)
    for align in aligns:
        t = (preferred // align) * align
        while t >= align:
            if dim % t == 0:
                return t
            t -= align
    return dim


def cheb_laplacian_dense(edge_index, edge_weight, num_nodes, lambda_max=2.0):
    """Dense scaled Chebyshev Laplacian  L_hat = (2/lambda_max)*(I - D^-1/2 A D^-1/2) - I.

    Matches torch_geometric get_laplacian('sym') semantics: degree accumulated over
    row = edge_index[0], identity (fill 1) self-loops added for EVERY node (so
    isolated nodes get L_hat diag = 0 with lambda_max=2), messages flow src->dst.
    """
    src, dst = edge_index[0], edge_index[1]
    w = edge_weight.astype(jnp.float32)
    deg = jnp.zeros((num_nodes,), jnp.float32).at[src].add(w)
    dis = jnp.where(deg > 0, jax.lax.rsqrt(deg), 0.0)
    norm = dis[src] * w * dis[dst]
    a_norm = jnp.zeros((num_nodes, num_nodes), jnp.float32).at[dst, src].add(norm)
    lap = jnp.eye(num_nodes, dtype=jnp.float32) - a_norm
    # TODO(synk): lambda_max is fixed at 2.0 (PyG default when not supplied).
    return (2.0 / lambda_max) * lap - jnp.eye(num_nodes, dtype=jnp.float32)


# -----------------------------------------------------------------------------
# Stage 1: tiled Laplacian matmul (Chebyshev propagation), bf16 MXU / f32 accumulate
# -----------------------------------------------------------------------------
def _matmul_kernel(a_ref, b_ref, o_ref):
    # Accumulate directly into the resident f32 output block (no scratch).
    @pl.when(pl.program_id(1) == 0)
    def _():
        o_ref[...] = jnp.zeros_like(o_ref)

    o_ref[...] += jnp.dot(a_ref[...], b_ref[...],
                          preferred_element_type=jnp.float32)


def _cheb_recurrence_kernel(a_ref, b_ref, c_ref, o_ref):
    # out = 2 * (A @ B) - C   (Chebyshev recursion step, residual fused in-kernel)
    @pl.when(pl.program_id(1) == 0)
    def _():
        o_ref[...] = jnp.zeros_like(o_ref)

    o_ref[...] += jnp.dot(a_ref[...], b_ref[...],
                          preferred_element_type=jnp.float32)

    @pl.when(pl.program_id(1) == pl.num_programs(1) - 1)
    def _():
        o_ref[...] = 2.0 * o_ref[...] - c_ref[...]


def _stage1_tiles(n, ncols, budget_bytes):
    def bytes_needed(tm, tk):
        return (2 * tm * tk * 2            # bf16 L_hat block, double-buffered
                + 2 * tk * ncols * 2       # bf16 B block, double-buffered
                + 2 * tm * ncols * 4       # f32 output block, double-buffered
                + 2 * tm * ncols * 4)      # f32 residual block (K>=3 path)

    # Row tile: 256/128-aligned when possible, capped at N/2 so the "parallel"
    # row axis has >=2 grid steps (both v7x TensorCores get work even at small N).
    tm = _pick_tile(n, max(min(256, n // 2), 8), (256, 128, 8))
    # Reduction tile: keep B fully resident (tk = N) when the budget allows so it
    # is not re-streamed once per row block; otherwise the biggest aligned tile.
    for tk_pref in (n, 2048, 1024, 512, 256, 128):
        tk = _pick_tile(n, tk_pref, (256, 128))
        if bytes_needed(tm, tk) <= budget_bytes:
            return tm, tk
    return tm, _pick_tile(n, 128, (128,))


def laplacian_matmul(l_hat_bf16, b, residual=None, *, vmem_budget=None):
    """Tiled, double-buffered  L_hat @ B  (or  2*L_hat@B - residual), bf16 MXU inputs,
    f32 accumulation into the resident output block, f32 result."""
    n = l_hat_bf16.shape[0]
    ncols = b.shape[1]
    if vmem_budget is None:
        vmem_budget = _vmem_budget_bytes()
    tm, tk = _stage1_tiles(n, ncols, int(vmem_budget * 0.75))
    grid = (n // tm, n // tk)

    in_specs = [
        pl.BlockSpec((tm, tk), lambda i, k: (i, k)),
        pl.BlockSpec((tk, ncols), lambda i, k: (k, 0)),
    ]
    # TODO(synk): for K>=3 the bf16 cast of the recurrence input compounds
    # quantization error; flip to f32 operands if tighter accuracy is required.
    args = [l_hat_bf16, b.astype(jnp.bfloat16)]
    kernel = _matmul_kernel
    if residual is not None:
        in_specs.append(pl.BlockSpec((tm, ncols), lambda i, k: (i, 0)))
        args.append(residual)               # residual stays f32
        kernel = _cheb_recurrence_kernel

    b_passes = 1 if tk == n else grid[0]     # B re-streamed per row block unless resident
    bytes_accessed = (2 * n * n                      # bf16 L_hat
                      + 2 * n * ncols * b_passes     # bf16 B stream(s)
                      + 4 * n * ncols                # f32 output
                      + (4 * n * ncols if residual is not None else 0))
    cost = pl.CostEstimate(flops=2 * n * n * ncols, transcendentals=0,
                           bytes_accessed=bytes_accessed)

    return pl.pallas_call(
        kernel,
        out_shape=jax.ShapeDtypeStruct((n, ncols), jnp.float32),
        grid_spec=pltpu.PrefetchScalarGridSpec(
            num_scalar_prefetch=0,
            grid=grid,
            in_specs=in_specs,
            out_specs=pl.BlockSpec((tm, ncols), lambda i, k: (i, 0)),
        ),
        compiler_params=pltpu.CompilerParams(
            dimension_semantics=("parallel", "arbitrary"),
            vmem_limit_bytes=vmem_budget,
        ),
        cost_estimate=cost,
    )(*args)


# -----------------------------------------------------------------------------
# Stage 2: precomposed (ChebConv combine + temporal Conv1d + bias + LeakyReLU)
# -----------------------------------------------------------------------------
def _make_stage2_kernel(cheb_k, negative_slope):
    def kernel(*refs):
        tx_refs = refs[:cheb_k]
        w_ref, b_ref, o_ref = refs[cheb_k:]
        acc = jnp.dot(tx_refs[0][...], w_ref[0],
                      preferred_element_type=jnp.float32)
        for k in range(1, cheb_k):
            acc = acc + jnp.dot(tx_refs[k][...], w_ref[k],
                                preferred_element_type=jnp.float32)
        y = acc + b_ref[...]
        o_ref[...] = jnp.where(y >= 0.0, y, negative_slope * y)
    return kernel


def _stage2_tile(n, in_lanes, out_lanes, cheb_k, budget_bytes):
    def bytes_needed(tm):
        return (cheb_k * 2 * tm * in_lanes * 4     # f32 Tx blocks, double-buffered
                + cheb_k * in_lanes * out_lanes * 4  # resident W_all
                + out_lanes * 4
                + 2 * tm * out_lanes * 4)          # f32 output block, double-buffered

    cap = max(n // 2, 8)                           # >=2 grid steps for v7x megacore
    for pref in (512, 256, 128, 64, 32, 16, 8):
        tm = _pick_tile(n, min(pref, cap), (256, 128, 8))
        if bytes_needed(tm) <= budget_bytes:
            return tm
    return _pick_tile(n, 8, (8,))


def cheb_conv_fused(tx_list, w_all, b_all, *, negative_slope, vmem_budget=None):
    """One node-tiled kernel: Y = LeakyReLU(sum_k Tx_k @ W_all[k] + b_all), single
    lane-dense (tm, l_out*cout) store."""
    n, in_lanes = tx_list[0].shape
    cheb_k = len(tx_list)
    out_lanes = w_all.shape[-1]
    if vmem_budget is None:
        vmem_budget = _vmem_budget_bytes()
    tm = _stage2_tile(n, in_lanes, out_lanes, cheb_k, int(vmem_budget * 0.75))
    grid = (n // tm,)

    kernel = _make_stage2_kernel(cheb_k, negative_slope)
    in_specs = ([pl.BlockSpec((tm, in_lanes), lambda i: (i, 0))] * cheb_k
                + [pl.BlockSpec((cheb_k, in_lanes, out_lanes), lambda i: (0, 0, 0)),
                   pl.BlockSpec((1, out_lanes), lambda i: (0, 0))])
    cost = pl.CostEstimate(
        flops=2 * n * cheb_k * in_lanes * out_lanes,
        transcendentals=0,
        bytes_accessed=4 * (cheb_k * n * in_lanes + n * out_lanes
                            + cheb_k * in_lanes * out_lanes + out_lanes),
    )
    return pl.pallas_call(
        kernel,
        out_shape=jax.ShapeDtypeStruct((n, out_lanes), jnp.float32),
        grid_spec=pltpu.PrefetchScalarGridSpec(
            num_scalar_prefetch=0,
            grid=grid,
            in_specs=in_specs,
            out_specs=pl.BlockSpec((tm, out_lanes), lambda i: (i, 0)),
        ),
        compiler_params=pltpu.CompilerParams(
            dimension_semantics=("parallel",),
            vmem_limit_bytes=vmem_budget,
        ),
        cost_estimate=cost,
    )(*tx_list, w_all, b_all)


# -----------------------------------------------------------------------------
# Module wrapper
# -----------------------------------------------------------------------------
class ChebConvMultiGraphPallas:
    """JAX/Pallas port of ChebConvMultiGraph (inference / eval mode).

    forward(x_list, A, E, batch_size): one ChebConv (K Chebyshev hops, sym norm,
    lambda_max=2.0) per timestep sharing the same batched graph (A, E), stacked over
    time, Conv1d over the temporal axis, LeakyReLU (dropout = identity in eval).
    Returns a list of length window_size with (num_nodes, out_channels) entries.
    """

    def __init__(self, window_size, in_channels=1, intermediate_dim=1,
                 out_channels=1, conv_kernel=3, conv_dilation=1, dropout=0.0,
                 k=2, num_series=0, seed=0):
        self.window_size = window_size
        self.in_channels = in_channels
        self.inter_dim = intermediate_dim
        self.out_channels = out_channels
        self.conv_kernel = conv_kernel
        self.conv_dilation = conv_dilation
        self.dropout_p = dropout   # TODO(synk): training-mode dropout (eval => identity)
        self.k = k
        self.num_series = num_series
        self.negative_slope = 0.01  # nn.LeakyReLU() default

        key = jax.random.PRNGKey(seed)
        kg, kc1, kc2 = jax.random.split(key, 3)
        # Per-timestep ChebConv weights (T, K, Cin, inter), glorot-uniform; bias zeros.
        lim_g = (6.0 / (in_channels + intermediate_dim)) ** 0.5
        self.w_gcn = jax.random.uniform(
            kg, (window_size, k, in_channels, intermediate_dim), jnp.float32,
            -lim_g, lim_g)
        self.b_gcn = jnp.zeros((window_size, intermediate_dim), jnp.float32)
        # Conv1d weights kept in torch layout (Cout, Cin=inter, Kc).
        lim_c = 1.0 / (intermediate_dim * conv_kernel) ** 0.5
        self.w_conv = jax.random.uniform(
            kc1, (out_channels, intermediate_dim, conv_kernel), jnp.float32,
            -lim_c, lim_c)
        self.b_conv = jax.random.uniform(
            kc2, (out_channels,), jnp.float32, -lim_c, lim_c)

        self._precompose()

    def _precompose(self):
        """Fold per-timestep ChebConv weights + Conv1d taps + both biases into one
        dense map: W_all[k] (window*cin, l_out*cout), b_all (1, l_out*cout)."""
        T, K, cin, inter = self.w_gcn.shape
        kc_n, dil, cout = self.conv_kernel, self.conv_dilation, self.out_channels
        pad = (kc_n // 2) * dil
        l_out = T + 2 * pad - dil * (kc_n - 1)
        w_all = jnp.zeros((K, T, cin, l_out, cout), jnp.float32)
        b_all = jnp.tile(self.b_conv[None, :], (l_out, 1))
        for tau in range(l_out):
            for kc in range(kc_n):
                t = tau - pad + kc * dil
                if 0 <= t < T:   # zero-padded conv taps contribute nothing
                    contrib = jnp.einsum('kci,oi->kco',
                                         self.w_gcn[t], self.w_conv[:, :, kc])
                    w_all = w_all.at[:, t, :, tau, :].add(contrib)
                    b_all = b_all.at[tau].add(self.w_conv[:, :, kc] @ self.b_gcn[t])
        # TODO(synk): for very large window*cin x l_out*cout the precomposed map should
        # revert to the factored (through inter) two-matmul form.
        self.w_all = w_all.reshape(K, T * cin, l_out * cout)
        self.b_all = b_all.reshape(1, l_out * cout)
        self.l_out = l_out

    def __call__(self, x_list, A, E, batch_size=None):
        # TODO(synk): the custom ChebConv in the reference also consumes batch_size /
        # num_series and the docstring mentions a layer that "fixes negative values in E";
        # neither appears in the provided forward, so A/E are assumed to already describe
        # the batched (block-diagonal) graph shared by all timesteps and E is used as given.
        x = jnp.stack(list(x_list), axis=0) if isinstance(x_list, (list, tuple)) else x_list
        t, n, cin = x.shape

        l_hat = cheb_laplacian_dense(A, E, n)
        l_hat_bf16 = l_hat.astype(jnp.bfloat16)   # bf16 MXU operand, cast once
        # TODO(synk): when the graph is known to be block-diagonal per sample, replace the
        # dense (N,N) L_hat with batched (num_series,num_series) blocks to cut O(N^2) work.

        # Node-major, lane-dense layout: x_flat[node, t*Cin + c] = x[t, node, c]
        x_flat = jnp.transpose(x, (1, 0, 2)).reshape(n, t * cin)

        budget = _vmem_budget_bytes()
        # Chebyshev propagation: Tx_0 = X, Tx_1 = L_hat X, Tx_k = 2 L_hat Tx_{k-1} - Tx_{k-2}
        txs = [x_flat]
        if self.k >= 2:
            txs.append(laplacian_matmul(l_hat_bf16, x_flat, vmem_budget=budget))
        for _ in range(2, self.k):
            txs.append(laplacian_matmul(l_hat_bf16, txs[-1], residual=txs[-2],
                                        vmem_budget=budget))

        out = cheb_conv_fused(txs, self.w_all, self.b_all,
                              negative_slope=self.negative_slope,
                              vmem_budget=budget)
        out = out.reshape(n, self.l_out, self.out_channels)   # free reshape of the slab
        return [out[:, i, :] for i in range(self.window_size)]


# -----------------------------------------------------------------------------
# Pure-JAX reference (mirrors the PyTorch forward; NCL conv layout, HIGHEST precision)
# -----------------------------------------------------------------------------
def reference_forward(x_list, A, E, mod):
    hp = jax.lax.Precision.HIGHEST
    x = jnp.stack(list(x_list), axis=0)
    t, n, _ = x.shape
    l_hat = cheb_laplacian_dense(A, E, n)

    gcn_outs = []
    for ti in range(t):
        xt = x[ti]
        out = jnp.dot(xt, mod.w_gcn[ti, 0], precision=hp)
        if mod.k >= 2:
            tx_prev2, tx_prev1 = xt, jnp.dot(l_hat, xt, precision=hp)
            out = out + jnp.dot(tx_prev1, mod.w_gcn[ti, 1], precision=hp)
            for kk in range(2, mod.k):
                txk = 2.0 * jnp.dot(l_hat, tx_prev1, precision=hp) - tx_prev2
                out = out + jnp.dot(txk, mod.w_gcn[ti, kk], precision=hp)
                tx_prev2, tx_prev1 = tx_prev1, txk
        gcn_outs.append(out + mod.b_gcn[ti])

    h = jnp.stack(gcn_outs, axis=1)                  # (N, T, inter)  == stack(dim=1)
    hc = jnp.transpose(h, (0, 2, 1))                 # (N, inter, T)  == transpose(1,2)
    pad = (mod.conv_kernel // 2) * mod.conv_dilation
    hpad = jnp.pad(hc, ((0, 0), (0, 0), (pad, pad)))
    l_out = t + 2 * pad - mod.conv_dilation * (mod.conv_kernel - 1)
    y = jnp.zeros((n, mod.out_channels, l_out), jnp.float32)
    for kc in range(mod.conv_kernel):
        sl = hpad[:, :, kc * mod.conv_dilation: kc * mod.conv_dilation + l_out]
        y = y + jnp.einsum('oi,nil->nol', mod.w_conv[:, :, kc], sl, precision=hp)
    y = y + mod.b_conv[None, :, None]
    y = jnp.transpose(y, (0, 2, 1))                  # (N, L_out, Cout) == transpose(1,2)
    y = jnp.where(y >= 0, y, mod.negative_slope * y)  # LeakyReLU; dropout is identity
    return [y[:, i, :] for i in range(mod.window_size)]


# -----------------------------------------------------------------------------
if __name__ == "__main__":
    window_size = 8
    num_series = 64
    batch = 2
    in_channels = 32
    inter_dim = 64
    out_channels = 64
    conv_kernel = 3
    conv_dilation = 1
    cheb_k = 2

    n_nodes = batch * num_series  # 128

    key = jax.random.PRNGKey(0)
    kx, kw = jax.random.split(key)
    x_stack = jax.random.normal(kx, (window_size, n_nodes, in_channels), jnp.float32)
    x_list = [x_stack[i] for i in range(window_size)]

    # Batched "multi-graph" adjacency: one bidirectional ring per sample
    # (block-diagonal over the batch), shared by every timestep.
    s_idx = jnp.arange(num_series, dtype=jnp.int32)
    srcs, dsts = [], []
    for b in range(batch):
        base = b * num_series
        u = base + s_idx
        v = base + (s_idx + 1) % num_series
        srcs += [u, v]
        dsts += [v, u]
    src = jnp.concatenate(srcs)
    dst = jnp.concatenate(dsts)
    edge_index = jnp.stack([src, dst], axis=0)                     # (2, E)
    edge_weight = jax.random.uniform(kw, (src.shape[0],), jnp.float32, 0.5, 1.5)

    model = ChebConvMultiGraphPallas(
        window_size, in_channels, inter_dim, out_channels,
        conv_kernel, conv_dilation, dropout=0.0, k=cheb_k,
        num_series=num_series, seed=0)

    out_list = model(x_list, edge_index, edge_weight, batch_size=batch)
    out = jax.block_until_ready(jnp.stack(out_list, axis=1))       # (N, T, Cout)

    ref_list = reference_forward(x_list, edge_index, edge_weight, model)
    ref = jax.block_until_ready(jnp.stack(ref_list, axis=1))

    assert out.shape == (n_nodes, window_size, out_channels), out.shape
    max_err = float(jnp.max(jnp.abs(out - ref)))
    # bf16 MXU operands in stage 1 vs the f32-HIGHEST reference -> 1e-2 tolerance.
    assert jnp.allclose(out, ref, rtol=1e-2, atol=1e-2), max_err
    print("KERNEL_OK")
</pallas_src>

<mosaic_0001>
module attributes {stable_mosaic.version = 11 : i64} {
  func.func @_matmul_kernel(%arg0: i32, %arg1: i32, %arg2: memref<64x128xbf16, #tpu.memory_space<vmem>>, %arg3: memref<128x256xbf16, #tpu.memory_space<vmem>>, %arg4: memref<64x256xf32, #tpu.memory_space<vmem>>) attributes {dimension_semantics = [#tpu.dimension_semantics<parallel>, #tpu.dimension_semantics<arbitrary>], iteration_bounds = array<i64: 2, 1>, scalar_prefetch = 0 : i64, scratch_operands = 0 : i64, tpu.core_type = #tpu.core_type<tc>, window_params = [{transform_indices = @transform_0, window_bounds = array<i64: 64, 128>}, {transform_indices = @transform_1, window_bounds = array<i64: 128, 256>}, {transform_indices = @transform_2, window_bounds = array<i64: 64, 256>}]} {
    %c0_i32 = arith.constant 0 : i32
    %0 = arith.cmpi eq, %arg1, %c0_i32 : i32
    %1 = arith.extui %0 : i1 to i32
    %c0_i32_0 = arith.constant 0 : i32
    %2 = arith.cmpi ne, %1, %c0_i32_0 : i32
    scf.if %2 {
      %cst_8 = arith.constant 0.000000e+00 : f32
      %9 = vector.broadcast %cst_8 : f32 to vector<64x256xf32>
      %c0_9 = arith.constant 0 : index
      %c0_10 = arith.constant 0 : index
      %10 = vector.load %arg4[%c0_9, %c0_10] : memref<64x256xf32, #tpu.memory_space<vmem>>, vector<64x256xf32>
      tpu.vector_store %arg4[%c0_9, %c0_10], %9 {strides = array<i32>} : memref<64x256xf32, #tpu.memory_space<vmem>>, vector<64x256xf32>,
    } else {
    }
    %c0 = arith.constant 0 : index
    %c0_1 = arith.constant 0 : index
    %3 = vector.load %arg4[%c0, %c0_1] : memref<64x256xf32, #tpu.memory_space<vmem>>, vector<64x256xf32>
    %c0_2 = arith.constant 0 : index
    %c0_3 = arith.constant 0 : index
    %4 = vector.load %arg2[%c0_2, %c0_3] : memref<64x128xbf16, #tpu.memory_space<vmem>>, vector<64x128xbf16>
    %c0_4 = arith.constant 0 : index
    %c0_5 = arith.constant 0 : index
    %5 = vector.load %arg3[%c0_4, %c0_5] : memref<128x256xbf16, #tpu.memory_space<vmem>>, vector<128x256xbf16>
    %cst = arith.constant dense<0.000000e+00> : vector<64x256xf32>
    %6 = tpu.matmul %4, %5, %cst {dimension_numbers = #tpu.dot_dimension_numbers<[1], [0], [0], [1], [0, 0, 1, 1], [], []>} : vector<64x128xbf16>, vector<128x256xbf16>, vector<64x256xf32> -> vector<64x256xf32>
    %7 = arith.addf %3, %6 : vector<64x256xf32>
    %c0_6 = arith.constant 0 : index
    %c0_7 = arith.constant 0 : index
    %8 = vector.load %arg4[%c0_6, %c0_7] : memref<64x256xf32, #tpu.memory_space<vmem>>, vector<64x256xf32>
    tpu.vector_store %arg4[%c0_6, %c0_7], %7 {strides = array<i32>} : memref<64x256xf32, #tpu.memory_space<vmem>>, vector<64x256xf32>,
    return
  }
  func.func @transform_0(%arg0: i32, %arg1: i32) -> (i32, i32) {
    %c0_i32 = arith.constant 0 : i32
    return %arg0, %arg1 : i32, i32
  }
  func.func @transform_1(%arg0: i32, %arg1: i32) -> (i32, i32) {
    %c0_i32 = arith.constant 0 : i32
    %c0_i32_0 = arith.constant 0 : i32
    return %arg1, %c0_i32 : i32, i32
  }
  func.func @transform_2(%arg0: i32, %arg1: i32) -> (i32, i32) {
    %c0_i32 = arith.constant 0 : i32
    %c0_i32_0 = arith.constant 0 : i32
    return %arg0, %c0_i32 : i32, i32
  }
}

</mosaic_0001>

<bundles_post_ra>
// kernel: tpu_custom_call.1
= control target key start
LH: loop header
LB: loop body
LE: loop exit
PB: predicated region body
PF: predicated region fallthrough
CT: control target
= control target key end

     0   :  { %7 = vsyncpa [#allocation3], 0  ;;  %s1136_s0 = inlined_call_operand.hbm [shape: bf16[128,128], index: 0, kind: input, shape index: {}]   ;;  %s1137_s1 = inlined_call_operand.hbm [shape: bf16[128,256], index: 1, kind: input, shape index: {}]   ;;  %s1138_s2 = inlined_call_operand.hbm [shape: f32[128,256], index: 2, kind: output, shape index: {}]  }
   0x1   :  { %9 = vsyncpa [#allocation3 + $0x1], 0 }
   0x2   :  { %10 = vsyncpa [#allocation6], 0 }
   0x3   :  { %11 = vsyncpa [#allocation4], 0 }
   0x4   :  { %13 = vsyncpa [#allocation4 + $0x1], 0  ;;  %s961_s9 = smov 0   ;;  %s963_s10 = smov 0  }
   0x5   :  { %s965_s11 = smov 0   ;;  %s967_s12 = smov 0  }
   0x6   :  { %s969_s13 = smov 0   ;;  %s971_s14 = smov 0  }
   0x7 LB: > { %s574_s15 = sadd.s32 4294967295, %s937_s14   ;;  %s575_s16 = sadd.s32 4294967294, %s937_s14   ;;  %s937_s14 = sphi %s971_s14, %s19_s14   ;;  %s933_s13 = sphi %s969_s13, %s1150_s13   ;;  %s929_s12 = sphi %s967_s12, %s1149_s12   ;;  %s925_s11 = sphi %s965_s11, %s1148_s11   ;;  %s921_s10 = sphi %s963_s10, %s1147_s10   ;;  %s917_s9 = sphi %s961_s9, %s1146_s9  }
   0x8   : > { %p53_p0 = scmp.ne.s32.totalorder %s921_s10, %s917_s9  ;;  %p995_p1 = scmp.eq.s32.totalorder %s574_s15, 0 }
   0x9   : > { %p999_p2 = scmp.eq.s32.totalorder %s574_s15, 1  ;;  %p109_p3 = scmp.eq.s32.totalorder %s575_s16, 1 }
   0xa   : > { %p1005_p4 = por %p995_p1, %p53_p0  ;;  %p576_p5 = scmp.ge.s32.totalorder %s937_s14, 1 }
   0xb   : > { %p1010_p6 = por %p109_p3, %p53_p0  ;;  %p116_p7 = scmp.lt.s32.totalorder %s937_s14, 3 }
   0xc   : > { %s131_s23 = sshll.u32 %s1137_s1, 4  ;;  %s939_s25 = smov [#allocation5]   ;;  %s132_s23 = int_to_ptr.hbm [resolvable:$true] %s131_s23 }
   0xd   : > { %p1018_p8 = pnand %p576_p5, %p116_p7  ;;  %s133_s26 = sshll.u32 %s939_s25, 4  ;;  %s134_s26 = int_to_ptr.vmem [resolvable:$true] %s133_s26 }
   0xe   : > { %p578_p11 = scmp.ge.s32.totalorder %s937_s14, 2  ;;  %s940_s27 = smov 128  }
   0xf   : > { %p719_p9 = pneg %p1018_p8  ;;  %s941_s28 = smov 8  }
  0x10   : > { %s31_s29 = sadd.s32 1, %s933_s13  ;;  %s40_s30 = sadd.s32 1, %s925_s11 }
  0x11   : > { %p720_p10 = pnand %p719_p9, %p995_p1  ;;  %p33_p12 = scmp.ge.s32.totalorder %s31_s29, 2 }
  0x12   : > { %p47_p13 = scmp.ne.s32.totalorder %s925_s11, %s921_s10  ;;  %p48_p0 = scmp.eq.s32.totalorder %s937_s14, 0 }
  0x13   : > { %722 = dma.hbm_to_vmem [thread:$0]  (!%p720_p10), %s132_s23, 2048, %s134_s26, [#allocation6], %s940_s27, %s940_s27, %s941_s28  }
  0x14   : > { %s1152_s29 = smov (%p33_p12, %s31_s29), 0  ;;  %p1034_p3 = por %p48_p0, %p47_p13 }
  0x15   : > { %p1040_p5 = por %p999_p2, %p47_p13  ;;  %s35_s5 = ssub.s32 %s933_s13, %s1152_s29 }
  0x16   : > { %p732_p7 = scmp.lt.s32.totalorder %s937_s14, 2  ;;  %p38_p9 = scmp.eq.s32.totalorder %s35_s5, 0 }
  0x17   : > { %s147_s6 = sand.u32 1, %s925_s11   ;;  %s672_s15 = sshll.u32 %s933_s13, 5 }
  0x18   : > { %s579_s7 = sshll.u32 %s147_s6, 5  ;;  %s157_s22 = scalar_lea.hbm %s1136_s0, %s672_s15 }
  0x19   : > { %s1049_s8 = scalar_select %p38_p9, %s925_s11, %s40_s30  }
  0x1a   : > { %s151_s23 = scalar_lea.vmem [#allocation2], %s579_s7  ;;  %s158_s18 = sshll.u32 %s157_s22, 4  ;;  %s159_s18 = int_to_ptr.hbm [resolvable:$true] %s158_s18 }
  0x1b   : > { %s160_s25 = sshll.u32 %s151_s23, 4  ;;  %p724_p2 = pnand %p732_p7, %p1034_p3  ;;  %s161_s25 = int_to_ptr.vmem [resolvable:$true] %s160_s25 }
  0x1c   : > { %s148_s26 = scalar_lea.sflag [#allocation3], %s147_s6  ;;  %s942_s27 = smov 64  }
  0x1d   : > { %s943_s28 = smov 4   ;;  %172 = sbr.rel (%p1018_p8) target bundleno = 232 (0xe8), region = 28 }
  0x1e   : > { %726 = dma.hbm_to_vmem [thread:$0]  (!%p724_p2), %s159_s18, 512, %s161_s25, %s148_s26, %s942_s27, %s942_s27, %s943_s28  }
  0x1f   : > { %s1060_s30 = sand.u32 (!%p1018_p8), 1, %s921_s10  }
  0x20   : > { %s583_s5 = sshll.u32 (!%p1018_p8), %s1060_s30, 5  ;;  %s175_s7 = scalar_lea.sflag (!%p1018_p8), [#allocation3], %s1060_s30 }
  0x21   : > { %s1064_s15 = scalar_lea.vmem (!%p1018_p8), [#allocation2], %s583_s5 }
  0x22   : > { %904 = dma.done.wait (%p1005_p4), %s175_s7, 512  }
  0x23   : > { %906 = vsyncadd (%p1005_p4), %s175_s7, 4294966784 }
  0x24   : > { %908 = dma.done.wait (%p995_p1), [#allocation6], 2048  }
  0x25   : > { %910 = vsyncadd (%p995_p1), [#allocation6], 4294965248  ;;  %v660_v0 = vld [vmem:[#allocation5 + $0x70] sm:$0xf]  ;;  %v692_v1 = vld [vmem:[#allocation5 + $0x74] sm:$0xf0] }
  0x26   : > { %v691_v2 = vld [vmem:[#allocation5 + $0x74] sm:$0xf]  ;;  %v661_v3 = vor.u32 %v692_v1, %v660_v0  ;;  %v662_v4 = vld [vmem:[#allocation5 + $0x78] sm:$0xf0]  ;;  %v652_v5 = vld [vmem:[#allocation5 + $0x60] sm:$0xf] }
  0x27   : > { %v690_v6 = vld [vmem:[#allocation5 + $0x64] sm:$0xf0]  ;;  %v665_v7 = vor.u32 %v691_v2, %v662_v4  ;;  %v689_v8 = vld [vmem:[#allocation5 + $0x64] sm:$0xf]  ;;  %v654_v9 = vld [vmem:[#allocation5 + $0x68] sm:$0xf0] }
  0x28   : > { %372 = vmatpush.bf16.msra.mxu0 %v661_v3  ;;  %695 = vmatpush.bf16.msra.mxu2 %v661_v3  ;;  %v653_v10 = vor.u32 %v690_v6, %v652_v5  ;;  %v657_v11 = vor.u32 %v689_v8, %v654_v9  ;;  %v644_v12 = vld [vmem:[#allocation5 + $0x50] sm:$0xf]  ;;  %v688_v13 = vld [vmem:[#allocation5 + $0x54] sm:$0xf0]  ;;  %v687_v14 = vld [vmem:[#allocation5 + $0x54] sm:$0xf] }
  0x29   : > { %401 = vmatpush.bf16.msra.mxu1 %v665_v7  ;;  %703 = vmatpush.bf16.msra.mxu3 %v665_v7  ;;  %v646_v15 = vld [vmem:[#allocation5 + $0x58] sm:$0xf0]  ;;  %v645_v16 = vor.u32 %v688_v13, %v644_v12  ;;  %v636_v18 = vld [vmem:[#allocation5 + $0x40] sm:$0xf]  ;;  %v686_v19 = vld [vmem:[#allocation5 + $0x44] sm:$0xf0] }
  0x2a   : > { %v649_v17 = vor.u32 %v687_v14, %v646_v15  ;;  %v685_v20 = vld [vmem:[#allocation5 + $0x44] sm:$0xf]  ;;  %v638_v21 = vld [vmem:[#allocation5 + $0x48] sm:$0xf0]  ;;  %v637_v22 = vor.u32 %v686_v19, %v636_v18  ;;  %v628_v24 = vld [vmem:[#allocation5 + $0x30] sm:$0xf] }
  0x2b   : > { %v641_v23 = vor.u32 %v685_v20, %v638_v21  ;;  %v684_v25 = vld [vmem:[#allocation5 + $0x34] sm:$0xf0]  ;;  %v683_v26 = vld [vmem:[#allocation5 + $0x34] sm:$0xf]  ;;  %v630_v27 = vld [vmem:[#allocation5 + $0x38] sm:$0xf0] }
  0x2c   : > { %373 = vmatpush.bf16.msra.mxu0 %v653_v10  ;;  %696 = vmatpush.bf16.msra.mxu2 %v653_v10  ;;  %v629_v28 = vor.u32 %v684_v25, %v628_v24  ;;  %v633_v29 = vor.u32 %v683_v26, %v630_v27  ;;  %v620_v30 = vld [vmem:[#allocation5 + $0x20] sm:$0xf]  ;;  %v682_v31 = vld [vmem:[#allocation5 + $0x24] sm:$0xf0]  ;;  %v681_v32 = vld [vmem:[#allocation5 + $0x24] sm:$0xf] }
  0x2d   : > { %402 = vmatpush.bf16.msra.mxu1 %v657_v11  ;;  %704 = vmatpush.bf16.msra.mxu3 %v657_v11  ;;  %v622_v33 = vld [vmem:[#allocation5 + $0x28] sm:$0xf0]  ;;  %v621_v34 = vor.u32 %v682_v31, %v620_v30  ;;  %v612_v36 = vld [vmem:[#allocation5 + $0x10] sm:$0xf]  ;;  %v680_v37 = vld [vmem:[#allocation5 + $0x14] sm:$0xf0] }
  0x2e   : > { %v625_v35 = vor.u32 %v681_v32, %v622_v33  ;;  %v679_v38 = vld [vmem:[#allocation5 + $0x14] sm:$0xf]  ;;  %v614_v39 = vld [vmem:[#allocation5 + $0x18] sm:$0xf0]  ;;  %v613_v40 = vor.u32 %v680_v37, %v612_v36  ;;  %v604_v42 = vld [vmem:[#allocation5] sm:$0xf] }
  0x2f   : > { %v617_v41 = vor.u32 %v679_v38, %v614_v39  ;;  %v678_v43 = vld [vmem:[#allocation5 + $0x4] sm:$0xf0]  ;;  %v677_v44 = vld [vmem:[#allocation5 + $0x4] sm:$0xf]  ;;  %v606_v45 = vld [vmem:[#allocation5 + $0x8] sm:$0xf0] }
  0x30   : > { %374 = vmatpush.bf16.msra.mxu0 %v645_v16  ;;  %697 = vmatpush.bf16.msra.mxu2 %v645_v16  ;;  %v605_v46 = vor.u32 %v678_v43, %v604_v42  ;;  %v609_v47 = vor.u32 %v677_v44, %v606_v45  ;;  %v673_v48 = vld [vmem:[%s1064_s15] sm:$0xff]  ;;  %v675_v49 = vld [vmem:[%s1064_s15 + $0x10] sm:$0xff]  ;;  %v674_v50 = vld [vmem:[%s1064_s15 + $0x8] sm:$0xff]  ;;  %s585_s17 = sshll.u32 %s1060_s30, 7  ;;  %s694_s24 = sshll.u32 %s929_s12, 7 }
  0x31   : > { %403 = vmatpush.bf16.msra.mxu1 %v649_v17  ;;  %705 = vmatpush.bf16.msra.mxu3 %v649_v17  ;;  %v676_v51 = vld [vmem:[%s1064_s15 + $0x18] sm:$0xff]  ;;  %s1079_s19 = scalar_lea.vmem [#allocation7], %s585_s17  ;;  %s475_s16 = scalar_lea.hbm %s1138_s2, %s694_s24 }
  0x32   : > { %s476_s21 = sshll.u32 %s1079_s19, 4  ;;  %s478_s22 = sshll.u32 %s475_s16, 4  ;;  %s477_s21 = int_to_ptr.vmem [resolvable:$true] %s476_s21  ;;  %s479_s22 = int_to_ptr.hbm [resolvable:$true] %s478_s22 }
  0x33   : > { %s463_s12 = scalar_lea.sflag [#allocation4], %s1060_s30  ;;  %s865_s23 = sshra.s32 %s479_s22, 4  ;;  %s866_s23 = int_to_ptr.hbm [resolvable:$true] %s865_s23 }
  0x34   : > { %375 = vmatpush.bf16.msra.mxu0 %v637_v22  ;;  %698 = vmatpush.bf16.msra.mxu2 %v637_v22  ;;  %s867_s25 = scalar_lea.hbm %s866_s23, 128  ;;  %s871_s27 = scalar_lea.hbm %s1138_s2, 256 }
  0x35   : > { %404 = vmatpush.bf16.msra.mxu1 %v641_v23  ;;  %706 = vmatpush.bf16.msra.mxu3 %v641_v23  ;;  %p868_p1 = scmp.ne.s32.totalorder %s866_s23, %s867_s25  ;;  %p872_p10 = scmp.lt.s32.totalorder %s866_s23, %s1138_s2 }
  0x36   : > { %p873_p12 = scmp.lt.s32.totalorder %s871_s27, %s867_s25 }
  0x37   : > { %p869_p4 = pnand %p868_p1, %p1040_p5 }
  0x38   : > { %376 = vmatpush.bf16.msra.mxu0 %v629_v28  ;;  %699 = vmatpush.bf16.msra.mxu2 %v629_v28  ;;  %p874_p13 = por %p873_p12, %p872_p10 }
  0x39   : > { %405 = vmatpush.bf16.msra.mxu1 %v633_v29  ;;  %707 = vmatpush.bf16.msra.mxu3 %v633_v29  ;;  %p870_p8 = pneg %p869_p4 }
  0x3b   : > { %p875_p0 = pnand %p874_p13, %p870_p8 }
  0x3c   : > { %377 = vmatpush.bf16.msra.mxu0 %v621_v34  ;;  %700 = vmatpush.bf16.msra.mxu2 %v621_v34 }
  0x3d   : > { %406 = vmatpush.bf16.msra.mxu1 %v625_v35  ;;  %708 = vmatpush.bf16.msra.mxu3 %v625_v35 }
  0x40   : > { %378 = vmatpush.bf16.msra.mxu0 %v613_v40  ;;  %701 = vmatpush.bf16.msra.mxu2 %v613_v40 }
  0x41   : > { %407 = vmatpush.bf16.msra.mxu1 %v617_v41  ;;  %709 = vmatpush.bf16.msra.mxu3 %v617_v41 }
  0x44   : > { %379 = vmatpush.bf16.msra.mxu0 %v605_v46  ;;  %702 = vmatpush.bf16.msra.mxu2 %v605_v46 }
  0x45   : > { %408 = vmatpush.bf16.msra.mxu1 %v609_v47  ;;  %710 = vmatpush.bf16.msra.mxu3 %v609_v47 }
  0x47   : > { %380 = vmatmul.bf16.vlgmr.msra.gmra.mxu0 %v673_v48  ;;  %390 = vmatmul.bf16.vlgmr.msra.gmra.mxu2 %v675_v49 }
  0x48   : > { %409 = vmatmul.bf16.vlgmr.msra.gmra.mxu1 %v673_v48  ;;  %419 = vmatmul.bf16.vlgmr.msra.gmra.mxu3 %v675_v49 }
  0x57   : > { %385 = vmatmul.bf16.gmra.mxu0 %v674_v50  ;;  %395 = vmatmul.bf16.gmra.mxu2 %v676_v51 }
  0x58   : > { %414 = vmatmul.bf16.gmra.mxu1 %v674_v50  ;;  %424 = vmatmul.bf16.gmra.mxu3 %v676_v51 }
  0xc4   : > { %v381_v52 = vpop.f32.mrf.mxu0 }
  0xc5   : > { %v410_v53 = vpop.f32.mrf.mxu1  ;;  %446 = vst [vmem:[%s1079_s19] sm:$0xff] %v381_v52 }
  0xc6   : > { %447 = vst [vmem:[%s1079_s19 + $0x8] sm:$0xff] %v410_v53 }
  0xca   : > { %v391_v54 = vpop.f32.mrf.mxu2 }
  0xcb   : > { %v420_v55 = vpop.f32.mrf.mxu3  ;;  %454 = vst [vmem:[%s1079_s19 + $0x40] sm:$0xff] %v391_v54 }
  0xcc   : > { %v383_v56 = vpop.f32.mrf.mxu0  ;;  %455 = vst [vmem:[%s1079_s19 + $0x48] sm:$0xff] %v420_v55 }
  0xcd   : > { %v412_v57 = vpop.f32.mrf.mxu1  ;;  %448 = vst [vmem:[%s1079_s19 + $0x10] sm:$0xff] %v383_v56 }
  0xce   : > { %449 = vst [vmem:[%s1079_s19 + $0x18] sm:$0xff] %v412_v57 }
  0xd2   : > { %v393_v58 = vpop.f32.mrf.mxu2 }
  0xd3   : > { %v422_v59 = vpop.f32.mrf.mxu3  ;;  %456 = vst [vmem:[%s1079_s19 + $0x50] sm:$0xff] %v393_v58 }
  0xd4   : > { %v386_v60 = vpop.f32.mrf.mxu0  ;;  %457 = vst [vmem:[%s1079_s19 + $0x58] sm:$0xff] %v422_v59 }
  0xd5   : > { %v415_v61 = vpop.f32.mrf.mxu1  ;;  %450 = vst [vmem:[%s1079_s19 + $0x20] sm:$0xff] %v386_v60 }
  0xd6   : > { %451 = vst [vmem:[%s1079_s19 + $0x28] sm:$0xff] %v415_v61 }
  0xda   : > { %v396_v62 = vpop.f32.mrf.mxu2 }
  0xdb   : > { %v425_v63 = vpop.f32.mrf.mxu3  ;;  %458 = vst [vmem:[%s1079_s19 + $0x60] sm:$0xff] %v396_v62 }
  0xdc   : > { %v388_v0 = vpop.f32.mrf.mxu0  ;;  %459 = vst [vmem:[%s1079_s19 + $0x68] sm:$0xff] %v425_v63 }
  0xdd   : > { %v417_v1 = vpop.f32.mrf.mxu1  ;;  %452 = vst [vmem:[%s1079_s19 + $0x30] sm:$0xff] %v388_v0 }
  0xde   : > { %453 = vst [vmem:[%s1079_s19 + $0x38] sm:$0xff] %v417_v1 }
  0xe2   : > { %v398_v2 = vpop.f32.mrf.mxu2 }
  0xe3   : > { %v427_v3 = vpop.f32.mrf.mxu3  ;;  %460 = vst [vmem:[%s1079_s19 + $0x70] sm:$0xff] %v398_v2 }
  0xe4   : > { %461 = vst [vmem:[%s1079_s19 + $0x78] sm:$0xff] %v427_v3 }
  0xe5   : > { %878 = shalt.err (!%p875_p0)
}
  0xe6   : > { %s944_s30 = smov 256   ;;  %s945_s7 = smov 16  }
  0xe7   : > { %717 = dma.vmem_to_hbm [thread:$0]  (%p1040_p5), %s477_s21, 2048, %s479_s22, %s463_s12, %s944_s30, %s944_s30, %s945_s7  }
  0xe8 PF: > { %s493_s15 = sand.u32 1, %s917_s9   ;;  %p728_p3 = pnand %p578_p11, %p1010_p6 }
  0xe9   : > { %s494_s17 = scalar_lea.sflag [#allocation4], %s493_s15 }
  0xea   : > { %p729_p7 = pneg %p728_p3 }
  0xec   : > { %912 = dma.done.wait (%p729_p7), %s494_s17, 2048  }
  0xed   : > { %914 = vsyncadd (%p729_p7), %s494_s17, 4294965248  ;;  %s19_s14 = sadd.s32 1, %s937_s14   ;;  %s1146_s9 = smov %s921_s10 }
  0xee   : > { %p16_p9 = scmp.ge.s32.totalorder %s19_s14, 4   ;;  %s1147_s10 = smov %s925_s11 }
  0xef   : > { %s1148_s11 = smov %s1049_s8  ;;  %s1149_s12 = smov %s933_s13 }
  0xf0   : > { %s1150_s13 = smov %s1152_s29  ;;  %18 = sbr.rel (!%p16_p9) target bundleno = 7 (0x7), region = 82 }
  0xf5   :  { %500 = vsyncpa [#allocation3], 1 }
  0xf6   :  { %502 = vsyncpa [#allocation3 + $0x1], 1 }
  0xf7   :  { %503 = vsyncpa [#allocation6], 1 }
  0xf8   :  { %504 = vsyncpa [#allocation4], 1 }
  0xf9   :  { %506 = vsyncpa [#allocation4 + $0x1], 1 }

</bundles_post_ra>
